<compile_context>
chip_gen: v6e
topology: v6e:2x2x1
jax: 0.10.0
libtpu: 0.0.40
codegen_flags: <defaults>
</compile_context>

<pallas_src>
import functools
import math

import jax
import jax.numpy as jnp
from jax.experimental import pallas as pl
from jax.experimental.pallas import tpu as pltpu


def _round_up(x, m):
    return (x + m - 1) // m * m


# ----------------------------------------------------------------------------
# Pallas kernel: fused decoder forward for one batch tile
# ----------------------------------------------------------------------------
def _glvm_decoder_kernel(d_out,
                         zm_ref,                       # [TB, Lp+D]  bf16 (z | pad | m)
                         w_in_ref, b_in_ref,           # [Lp+D, H] bf16, [1, H] f32
                         w_r1_ref, b_r1_ref,           # [H, Cp]   bf16, [1, Cp] f32
                         w_r2_ref, b_r2_ref,           # [Cp, Cp]  bf16, [1, Cp] f32
                         w_head_ref, b_head_ref,       # [Cp, 2D]  bf16, [1, 2D] f32
                         out_ref):                     # [TB, 2D]  f32  (mean | var)
    # folded dim_increase + mask_embedding + expansion:  h = [z|m] @ W_in + b_in
    h = (jnp.dot(zm_ref[...], w_in_ref[...], preferred_element_type=jnp.float32)
         + b_in_ref[...])

    # reduction block: Linear(H->C) + ReLU, Linear(C->C) + ReLU
    r = (jnp.dot(h.astype(jnp.bfloat16), w_r1_ref[...],
                 preferred_element_type=jnp.float32) + b_r1_ref[...])
    r = jnp.maximum(r, 0.0)
    r = (jnp.dot(r.astype(jnp.bfloat16), w_r2_ref[...],
                 preferred_element_type=jnp.float32) + b_r2_ref[...])
    r = jnp.maximum(r, 0.0)

    # fused mean|var head: one [TB, 2D] matmul
    y = (jnp.dot(r.astype(jnp.bfloat16), w_head_ref[...],
                 preferred_element_type=jnp.float32) + b_head_ref[...])

    # PyTorch Softplus (beta=1, threshold=20) applied to columns [D:2D] only,
    # selected with a lane mask (no in-kernel slice/concat).
    col = jax.lax.broadcasted_iota(jnp.int32, y.shape, dimension=1)
    sp = jnp.where(y > 20.0, y, jnp.log1p(jnp.exp(jnp.minimum(y, 20.0))))
    out_ref[...] = jnp.where(col >= d_out, sp, y)


# ----------------------------------------------------------------------------
# Wrapper
# ----------------------------------------------------------------------------
def glvm_decoder_forward(z, m, kp, *, tile_b=512):
    """z: [B, L] f32, m: [B, D] f32, kp: folded kernel params -> (mean, var)."""
    B = z.shape[0]
    D = kp["d_out"]
    L = kp["latent"]
    Lp = kp["w_in"].shape[0] - D
    H = kp["w_in"].shape[1]
    Cp = kp["w_red1"].shape[1]

    # batch tile: multiple of 8, no larger than the padded batch
    tb = _round_up(min(tile_b, _round_up(B, 8)), 8)
    b_pad = _round_up(B, tb)

    # pack z and m into a single lane-contiguous bf16 input:  [ z | 0 | m ]
    zm = jnp.zeros((b_pad, Lp + D), jnp.bfloat16)
    zm = zm.at[:B, :L].set(z.astype(jnp.bfloat16))
    zm = zm.at[:B, Lp:].set(m.astype(jnp.bfloat16))

    full = lambda i: (0, 0)   # weights/biases resident across all grid steps

    out = pl.pallas_call(
        functools.partial(_glvm_decoder_kernel, D),
        out_shape=jax.ShapeDtypeStruct((b_pad, 2 * D), jnp.float32),
        grid=(b_pad // tb,),
        in_specs=[
            pl.BlockSpec((tb, Lp + D), lambda i: (i, 0)),   # zm (batch-tiled)
            pl.BlockSpec((Lp + D, H), full),
            pl.BlockSpec((1, H), full),
            pl.BlockSpec((H, Cp), full),
            pl.BlockSpec((1, Cp), full),
            pl.BlockSpec((Cp, Cp), full),
            pl.BlockSpec((1, Cp), full),
            pl.BlockSpec((Cp, 2 * D), full),
            pl.BlockSpec((1, 2 * D), full),
        ],
        out_specs=pl.BlockSpec((tb, 2 * D), lambda i: (i, 0)),
        compiler_params=pltpu.CompilerParams(
            dimension_semantics=("parallel",)),
    )(zm, kp["w_in"], kp["b_in"], kp["w_red1"], kp["b_red1"],
      kp["w_red2"], kp["b_red2"], kp["w_head"], kp["b_head"])

    return out[:B, :D], out[:B, D:]


# ----------------------------------------------------------------------------
# Parameters (PyTorch-style Linear init) + one-time fold/pad/cast for the kernel
# ----------------------------------------------------------------------------
def _linear_params(key, fan_in, fan_out):
    kw, kb = jax.random.split(key)
    bound = 1.0 / math.sqrt(fan_in)
    w = jax.random.uniform(kw, (fan_in, fan_out), jnp.float32, -bound, bound)
    b = jax.random.uniform(kb, (1, fan_out), jnp.float32, -bound, bound)
    return w, b


def make_module_params(key, input_size, latent_size, n_hidden):
    D, L, H = input_size, latent_size, n_hidden
    E = int(round(D / 2))          # mask_embed_size
    C = D + E                      # input_size_concat
    ks = jax.random.split(key, 7)
    w_di, b_di = _linear_params(ks[0], L, D)       # dim_increase
    w_me, b_me = _linear_params(ks[1], D, E)       # mask_embedding
    w_exp, b_exp = _linear_params(ks[2], C, H)     # expansion C -> H
    w_red1, b_red1 = _linear_params(ks[3], H, C)   # reduction 1
    w_red2, b_red2 = _linear_params(ks[4], C, C)   # reduction 2
    w_mean, b_mean = _linear_params(ks[5], C, D)   # mean head
    w_var, b_var = _linear_params(ks[6], C, D)     # var head
    return dict(w_di=w_di, b_di=b_di, w_me=w_me, b_me=b_me,
                w_exp=w_exp, b_exp=b_exp, w_red1=w_red1, b_red1=b_red1,
                w_red2=w_red2, b_red2=b_red2, w_mean=w_mean, b_mean=b_mean,
                w_var=w_var, b_var=b_var)


def fold_params(mp, latent_size):
    """Fold dim_increase/mask_embedding into the expansion layer, fuse the
    mean/var heads, zero-pad feature dims to bf16-tile multiples, cast weights
    to bf16 (biases stay f32)."""
    D = mp["w_di"].shape[1]
    L = latent_size
    E = mp["w_me"].shape[1]
    C = D + E
    H = mp["w_exp"].shape[1]

    Lp = _round_up(L, 16)          # bf16 sublane tile = 16
    Cp = _round_up(C, 16)

    w_exp_x = mp["w_exp"][:D]      # rows hitting x = dim_increase(z)
    w_exp_m = mp["w_exp"][D:]      # rows hitting mask_embedding(m)
    w_zh = mp["w_di"] @ w_exp_x    # [L, H]
    w_mh = mp["w_me"] @ w_exp_m    # [D, H]
    b_in = mp["b_di"] @ w_exp_x + mp["b_me"] @ w_exp_m + mp["b_exp"]   # [1, H]

    w_in = jnp.zeros((Lp + D, H), jnp.float32)
    w_in = w_in.at[:L].set(w_zh)
    w_in = w_in.at[Lp:].set(w_mh)

    w_red1 = jnp.zeros((H, Cp), jnp.float32).at[:, :C].set(mp["w_red1"])
    b_red1 = jnp.zeros((1, Cp), jnp.float32).at[:, :C].set(mp["b_red1"])
    w_red2 = jnp.zeros((Cp, Cp), jnp.float32).at[:C, :C].set(mp["w_red2"])
    b_red2 = jnp.zeros((1, Cp), jnp.float32).at[:, :C].set(mp["b_red2"])

    w_head = jnp.zeros((Cp, 2 * D), jnp.float32)
    w_head = w_head.at[:C, :D].set(mp["w_mean"])
    w_head = w_head.at[:C, D:].set(mp["w_var"])
    b_head = jnp.concatenate([mp["b_mean"], mp["b_var"]], axis=1)

    bf16 = jnp.bfloat16
    return dict(
        d_out=D, latent=L,
        w_in=w_in.astype(bf16), b_in=b_in,
        w_red1=w_red1.astype(bf16), b_red1=b_red1,
        w_red2=w_red2.astype(bf16), b_red2=b_red2,
        w_head=w_head.astype(bf16), b_head=b_head,
    )


# ----------------------------------------------------------------------------
# Pure-JAX f32 reference (faithful to the PyTorch forward, masked + uncertainty)
# ----------------------------------------------------------------------------
def reference_forward(z, m, mp):
    x = z @ mp["w_di"] + mp["b_di"]
    me = m @ mp["w_me"] + mp["b_me"]
    xc = jnp.concatenate([x, me], axis=1)
    h = xc @ mp["w_exp"] + mp["b_exp"]
    r = jax.nn.relu(h @ mp["w_red1"] + mp["b_red1"])
    r = jax.nn.relu(r @ mp["w_red2"] + mp["b_red2"])
    mean = r @ mp["w_mean"] + mp["b_mean"]
    var = jax.nn.softplus(r @ mp["w_var"] + mp["b_var"])
    return mean, var


if __name__ == "__main__":
    # Small shapes consistent with the module.
    input_size = 16    # D
    latent_size = 4    # L
    n_hidden = 32      # H
    batch = 16         # B (tile_b=8 below -> 2-step grid to exercise pipelining)

    key = jax.random.PRNGKey(0)
    k_params, k_z, k_m = jax.random.split(key, 3)

    mparams = make_module_params(k_params, input_size, latent_size, n_hidden)
    kparams = fold_params(mparams, latent_size)

    z = jax.random.normal(k_z, (batch, latent_size), jnp.float32)
    m = (jax.random.uniform(k_m, (batch, input_size)) > 0.5).astype(jnp.float32)

    mean, var = glvm_decoder_forward(z, m, kparams, tile_b=8)
    jax.block_until_ready((mean, var))

    mean_ref, var_ref = reference_forward(z, m, mparams)
    assert mean.shape == (batch, input_size) and var.shape == (batch, input_size)
    # bf16 weights/activations on the MXU (f32 accumulation) vs. f32 reference:
    # observed deviation is ~1e-3; tolerance below still catches wiring bugs.
    assert jnp.allclose(mean, mean_ref, atol=3e-2, rtol=3e-2), \
        float(jnp.max(jnp.abs(mean - mean_ref)))
    assert jnp.allclose(var, var_ref, atol=3e-2, rtol=3e-2), \
        float(jnp.max(jnp.abs(var - var_ref)))

    print("KERNEL_OK")
</pallas_src>

<mosaic_0001>
module attributes {stable_mosaic.version = 11 : i64} {
  func.func @_glvm_decoder_kernel(%arg0: i32, %arg1: memref<8x32xbf16, #tpu.memory_space<vmem>>, %arg2: memref<32x32xbf16, #tpu.memory_space<vmem>>, %arg3: memref<1x32xf32, #tpu.memory_space<vmem>>, %arg4: memref<32x32xbf16, #tpu.memory_space<vmem>>, %arg5: memref<1x32xf32, #tpu.memory_space<vmem>>, %arg6: memref<32x32xbf16, #tpu.memory_space<vmem>>, %arg7: memref<1x32xf32, #tpu.memory_space<vmem>>, %arg8: memref<32x32xbf16, #tpu.memory_space<vmem>>, %arg9: memref<1x32xf32, #tpu.memory_space<vmem>>, %arg10: memref<8x32xf32, #tpu.memory_space<vmem>>) attributes {dimension_semantics = [#tpu.dimension_semantics<parallel>], iteration_bounds = array<i64: 2>, scalar_prefetch = 0 : i64, scratch_operands = 0 : i64, tpu.core_type = #tpu.core_type<tc>, window_params = [{transform_indices = @transform_0, window_bounds = array<i64: 8, 32>}, {pipeline_mode = #tpu.pipeline_mode<synchronous>, transform_indices = @transform_1, window_bounds = array<i64: 32, 32>}, {pipeline_mode = #tpu.pipeline_mode<synchronous>, transform_indices = @transform_2, window_bounds = array<i64: 1, 32>}, {pipeline_mode = #tpu.pipeline_mode<synchronous>, transform_indices = @transform_3, window_bounds = array<i64: 32, 32>}, {pipeline_mode = #tpu.pipeline_mode<synchronous>, transform_indices = @transform_4, window_bounds = array<i64: 1, 32>}, {pipeline_mode = #tpu.pipeline_mode<synchronous>, transform_indices = @transform_5, window_bounds = array<i64: 32, 32>}, {pipeline_mode = #tpu.pipeline_mode<synchronous>, transform_indices = @transform_6, window_bounds = array<i64: 1, 32>}, {pipeline_mode = #tpu.pipeline_mode<synchronous>, transform_indices = @transform_7, window_bounds = array<i64: 32, 32>}, {pipeline_mode = #tpu.pipeline_mode<synchronous>, transform_indices = @transform_8, window_bounds = array<i64: 1, 32>}, {transform_indices = @transform_9, window_bounds = array<i64: 8, 32>}]} {
    %c0 = arith.constant 0 : index
    %c0_0 = arith.constant 0 : index
    %0 = vector.load %arg1[%c0, %c0_0] : memref<8x32xbf16, #tpu.memory_space<vmem>>, vector<8x32xbf16>
    %c0_1 = arith.constant 0 : index
    %c0_2 = arith.constant 0 : index
    %1 = vector.load %arg2[%c0_1, %c0_2] : memref<32x32xbf16, #tpu.memory_space<vmem>>, vector<32x32xbf16>
    %cst = arith.constant dense<0.000000e+00> : vector<8x32xf32>
    %2 = tpu.matmul %0, %1, %cst {dimension_numbers = #tpu.dot_dimension_numbers<[1], [0], [0], [1], [0, 0, 1, 1], [], []>} : vector<8x32xbf16>, vector<32x32xbf16>, vector<8x32xf32> -> vector<8x32xf32>
    %c0_3 = arith.constant 0 : index
    %c0_4 = arith.constant 0 : index
    %3 = vector.load %arg3[%c0_3, %c0_4] : memref<1x32xf32, #tpu.memory_space<vmem>>, vector<1x32xf32>
    %4 = vector.broadcast %3 : vector<1x32xf32> to vector<8x32xf32>
    %5 = arith.addf %2, %4 : vector<8x32xf32>
    %6 = arith.truncf %5 : vector<8x32xf32> to vector<8x32xbf16>
    %c0_5 = arith.constant 0 : index
    %c0_6 = arith.constant 0 : index
    %7 = vector.load %arg4[%c0_5, %c0_6] : memref<32x32xbf16, #tpu.memory_space<vmem>>, vector<32x32xbf16>
    %cst_7 = arith.constant dense<0.000000e+00> : vector<8x32xf32>
    %8 = tpu.matmul %6, %7, %cst_7 {dimension_numbers = #tpu.dot_dimension_numbers<[1], [0], [0], [1], [0, 0, 1, 1], [], []>} : vector<8x32xbf16>, vector<32x32xbf16>, vector<8x32xf32> -> vector<8x32xf32>
    %c0_8 = arith.constant 0 : index
    %c0_9 = arith.constant 0 : index
    %9 = vector.load %arg5[%c0_8, %c0_9] : memref<1x32xf32, #tpu.memory_space<vmem>>, vector<1x32xf32>
    %10 = vector.broadcast %9 : vector<1x32xf32> to vector<8x32xf32>
    %11 = arith.addf %8, %10 : vector<8x32xf32>
    %cst_10 = arith.constant 0.000000e+00 : f32
    %12 = vector.broadcast %cst_10 : f32 to vector<8x32xf32>
    %13 = arith.maximumf %11, %12 : vector<8x32xf32>
    %14 = arith.truncf %13 : vector<8x32xf32> to vector<8x32xbf16>
    %c0_11 = arith.constant 0 : index
    %c0_12 = arith.constant 0 : index
    %15 = vector.load %arg6[%c0_11, %c0_12] : memref<32x32xbf16, #tpu.memory_space<vmem>>, vector<32x32xbf16>
    %cst_13 = arith.constant dense<0.000000e+00> : vector<8x32xf32>
    %16 = tpu.matmul %14, %15, %cst_13 {dimension_numbers = #tpu.dot_dimension_numbers<[1], [0], [0], [1], [0, 0, 1, 1], [], []>} : vector<8x32xbf16>, vector<32x32xbf16>, vector<8x32xf32> -> vector<8x32xf32>
    %c0_14 = arith.constant 0 : index
    %c0_15 = arith.constant 0 : index
    %17 = vector.load %arg7[%c0_14, %c0_15] : memref<1x32xf32, #tpu.memory_space<vmem>>, vector<1x32xf32>
    %18 = vector.broadcast %17 : vector<1x32xf32> to vector<8x32xf32>
    %19 = arith.addf %16, %18 : vector<8x32xf32>
    %cst_16 = arith.constant 0.000000e+00 : f32
    %20 = vector.broadcast %cst_16 : f32 to vector<8x32xf32>
    %21 = arith.maximumf %19, %20 : vector<8x32xf32>
    %22 = arith.truncf %21 : vector<8x32xf32> to vector<8x32xbf16>
    %c0_17 = arith.constant 0 : index
    %c0_18 = arith.constant 0 : index
    %23 = vector.load %arg8[%c0_17, %c0_18] : memref<32x32xbf16, #tpu.memory_space<vmem>>, vector<32x32xbf16>
    %cst_19 = arith.constant dense<0.000000e+00> : vector<8x32xf32>
    %24 = tpu.matmul %22, %23, %cst_19 {dimension_numbers = #tpu.dot_dimension_numbers<[1], [0], [0], [1], [0, 0, 1, 1], [], []>} : vector<8x32xbf16>, vector<32x32xbf16>, vector<8x32xf32> -> vector<8x32xf32>
    %c0_20 = arith.constant 0 : index
    %c0_21 = arith.constant 0 : index
    %25 = vector.load %arg9[%c0_20, %c0_21] : memref<1x32xf32, #tpu.memory_space<vmem>>, vector<1x32xf32>
    %26 = vector.broadcast %25 : vector<1x32xf32> to vector<8x32xf32>
    %27 = arith.addf %24, %26 : vector<8x32xf32>
    %28 = tpu.iota {dimensions = array<i32: 1>} : vector<8x32xi32>
    %cst_22 = arith.constant 2.000000e+01 : f32
    %29 = vector.broadcast %cst_22 : f32 to vector<8x32xf32>
    %30 = arith.cmpf ogt, %27, %29 : vector<8x32xf32>
    %cst_23 = arith.constant 2.000000e+01 : f32
    %31 = vector.broadcast %cst_23 : f32 to vector<8x32xf32>
    %32 = arith.minimumf %27, %31 : vector<8x32xf32>
    %33 = math.exp %32 : vector<8x32xf32>
    %34 = math.log1p %33 : vector<8x32xf32>
    %35 = arith.select %30, %27, %34 : vector<8x32xi1>, vector<8x32xf32>
    %c16_i32 = arith.constant 16 : i32
    %36 = vector.broadcast %c16_i32 : i32 to vector<8x32xi32>
    %37 = arith.cmpi sge, %28, %36 : vector<8x32xi32>
    %38 = arith.select %37, %35, %27 : vector<8x32xi1>, vector<8x32xf32>
    %c0_24 = arith.constant 0 : index
    %c0_25 = arith.constant 0 : index
    %39 = vector.load %arg10[%c0_24, %c0_25] : memref<8x32xf32, #tpu.memory_space<vmem>>, vector<8x32xf32>
    tpu.vector_store %arg10[%c0_24, %c0_25], %38 {strides = array<i32>} : memref<8x32xf32, #tpu.memory_space<vmem>>, vector<8x32xf32>,
    return
  }
  func.func @transform_0(%arg0: i32) -> (i32, i32) {
    %c0_i32 = arith.constant 0 : i32
    %c0_i32_0 = arith.constant 0 : i32
    return %arg0, %c0_i32 : i32, i32
  }
  func.func @transform_1(%arg0: i32) -> (i32, i32) {
    %c0_i32 = arith.constant 0 : i32
    %c0_i32_0 = arith.constant 0 : i32
    %c0_i32_1 = arith.constant 0 : i32
    return %c0_i32, %c0_i32_0 : i32, i32
  }
  func.func @transform_2(%arg0: i32) -> (i32, i32) {
    %c0_i32 = arith.constant 0 : i32
    %c0_i32_0 = arith.constant 0 : i32
    %c0_i32_1 = arith.constant 0 : i32
    return %c0_i32, %c0_i32_0 : i32, i32
  }
  func.func @transform_3(%arg0: i32) -> (i32, i32) {
    %c0_i32 = arith.constant 0 : i32
    %c0_i32_0 = arith.constant 0 : i32
    %c0_i32_1 = arith.constant 0 : i32
    return %c0_i32, %c0_i32_0 : i32, i32
  }
  func.func @transform_4(%arg0: i32) -> (i32, i32) {
    %c0_i32 = arith.constant 0 : i32
    %c0_i32_0 = arith.constant 0 : i32
    %c0_i32_1 = arith.constant 0 : i32
    return %c0_i32, %c0_i32_0 : i32, i32
  }
  func.func @transform_5(%arg0: i32) -> (i32, i32) {
    %c0_i32 = arith.constant 0 : i32
    %c0_i32_0 = arith.constant 0 : i32
    %c0_i32_1 = arith.constant 0 : i32
    return %c0_i32, %c0_i32_0 : i32, i32
  }
  func.func @transform_6(%arg0: i32) -> (i32, i32) {
    %c0_i32 = arith.constant 0 : i32
    %c0_i32_0 = arith.constant 0 : i32
    %c0_i32_1 = arith.constant 0 : i32
    return %c0_i32, %c0_i32_0 : i32, i32
  }
  func.func @transform_7(%arg0: i32) -> (i32, i32) {
    %c0_i32 = arith.constant 0 : i32
    %c0_i32_0 = arith.constant 0 : i32
    %c0_i32_1 = arith.constant 0 : i32
    return %c0_i32, %c0_i32_0 : i32, i32
  }
  func.func @transform_8(%arg0: i32) -> (i32, i32) {
    %c0_i32 = arith.constant 0 : i32
    %c0_i32_0 = arith.constant 0 : i32
    %c0_i32_1 = arith.constant 0 : i32
    return %c0_i32, %c0_i32_0 : i32, i32
  }
  func.func @transform_9(%arg0: i32) -> (i32, i32) {
    %c0_i32 = arith.constant 0 : i32
    %c0_i32_0 = arith.constant 0 : i32
    return %arg0, %c0_i32 : i32, i32
  }
}

</mosaic_0001>

<bundles_post_ra>
// kernel: tpu_custom_call.1
= control target key start
LH: loop header
LB: loop body
LE: loop exit
PB: predicated region body
PF: predicated region fallthrough
CT: control target
= control target key end

     0   :  { %s1511_s0 = inlined_call_operand.hbm [shape: bf16[16,32], index: 0, kind: input, shape index: {}]   ;;  %s1512_s1 = inlined_call_operand.hbm [shape: bf16[32,32], index: 1, kind: input, shape index: {}]   ;;  %s1513_s2 = inlined_call_operand.vmem [shape: f32[1,32], index: 2, kind: input, shape index: {}]   ;;  %s1514_s3 = inlined_call_operand.hbm [shape: bf16[32,32], index: 3, kind: input, shape index: {}]   ;;  %s1515_s4 = inlined_call_operand.vmem [shape: f32[1,32], index: 4, kind: input, shape index: {}]   ;;  %s1516_s5 = inlined_call_operand.hbm [shape: bf16[32,32], index: 5, kind: input, shape index: {}]   ;;  %s1517_s6 = inlined_call_operand.vmem [shape: f32[1,32], index: 6, kind: input, shape index: {}]   ;;  %s1518_s7 = inlined_call_operand.hbm [shape: bf16[32,32], index: 7, kind: input, shape index: {}]   ;;  %s1519_s8 = inlined_call_operand.vmem [shape: f32[1,32], index: 8, kind: input, shape index: {}]   ;;  %s1520_s9 = inlined_call_operand.hbm [shape: f32[16,32], index: 9, kind: output, shape index: {}]  }
   0x1   :  { %1525 = sst [smem:[#allocation16_spill]] %s1512_s1 }
   0x2   :  { %1526 = sst [smem:[#allocation17_spill]] %s1514_s3 }
   0x3   :  { %1527 = sst [smem:[#allocation18_spill]] %s1516_s5 }
   0x4   :  { %1528 = sst [smem:[#allocation19_spill]] %s1518_s7 }
   0x5   :  { %14 = vsyncpa [#allocation3], 0 }
   0x6   :  { %16 = vsyncpa [#allocation3 + $0x1], 0 }
   0x7   :  { %17 = vsyncpa [#allocation6], 0 }
   0x8   :  { %18 = vsyncpa [#allocation9], 0 }
   0x9   :  { %19 = vsyncpa [#allocation4], 0 }
   0xa   :  { %21 = vsyncpa [#allocation4 + $0x1], 0  ;;  %s1268_s30 = smov 0   ;;  %s1270_s10 = smov 0  }
   0xb   :  { %s1272_s11 = smov 0   ;;  %s1274_s12 = smov 0  }
   0xc LB: > { %s1208_s13 = smov [#allocation5]   ;;  %s1289_s15 = sadd.s32 4294967295, %s1206_s12   ;;  %s1206_s12 = sphi %s1274_s12, %s1552_s12   ;;  %s1202_s11 = sphi %s1272_s11, %s1551_s11   ;;  %s1198_s10 = sphi %s1270_s10, %s1550_s10   ;;  %s1194_s30 = sphi %s1268_s30, %s1549_s30  }
   0xd   : > { %s264_s14 = sshll.u32 %s1208_s13, 4  ;;  %p820_p0 = scmp.ge.s32.totalorder %s1206_s12, 1  ;;  %s265_s14 = int_to_ptr.vmem [resolvable:$true] %s264_s14 }
   0xe   : > { %p1521_p1 = scmp.eq.s32.totalorder %s1289_s15, 0  ;;  %p252_p2 = scmp.lt.s32.totalorder %s1206_s12, 3 }
   0xf   : > { %s1209_s17 = smov [#allocation8]   ;;  %s1210_s20 = smov [#allocation7]  }
  0x10   : > { %p1294_p3 = pnand %p820_p0, %p252_p2  ;;  %s296_s18 = sshll.u32 %s1209_s17, 4  ;;  %s1307_s18 = int_to_ptr.vmem [resolvable:$true] %s296_s18 }
  0x11   : > { %s280_s21 = sshll.u32 %s1210_s20, 4  ;;  %s1013_s22 = scalar_lea.vmem %s265_s14, 256  ;;  %s1309_s21 = int_to_ptr.vmem [resolvable:$true] %s280_s21 }
  0x12   : > { %s1529_s16 = scalar_select %p1294_p3, 1, 0 }
  0x13   : > { %p919_p5 = pneg %p1294_p3  ;;  %p1014_p8 = scmp.ne.s32.totalorder %s265_s14, %s1013_s22 }
  0x14   : > { %p1021_p11 = scmp.lt.s32.totalorder %s265_s14, %s265_s14  ;;  %p1022_p12 = scmp.lt.s32.totalorder %s1013_s22, %s1013_s22 }
  0x15   : > { %p1303_p6 = pnand %p919_p5, %p1521_p1 }
  0x16   : > { %p1023_p13 = por %p1022_p12, %p1021_p11 }
  0x17   : > { %p1004_p7 = pneg %p1303_p6 }
  0x19   : > { %p1016_p9 = pnand %p1014_p8, %p1004_p7 }
  0x1b   : > { %p1017_p10 = pneg %p1016_p9 }
  0x1d   : > { %p1024_p0 = pnand %p1023_p13, %p1017_p10 }
  0x1f   : > { %1027 = shalt.err (!%p1024_p0)
}
  0x20   : > { %s1211_s23 = smov 64   ;;  %s1212_s24 = smov 4  }
  0x21   : > { %s1531_s1 = sld [smem:[#allocation16_spill]]  ;;  %s1039_s27 = scalar_lea.vmem %s1307_s18, 256 }
  0x22   : > { %p1040_p2 = scmp.ne.s32.totalorder %s1307_s18, %s1039_s27  ;;  %p1047_p9 = scmp.lt.s32.totalorder %s1307_s18, %s1307_s18 }
  0x23   : > { %p1048_p10 = scmp.lt.s32.totalorder %s1039_s27, %s1039_s27 }
  0x24   : > { %p1042_p5 = pnand %p1040_p2, %p1004_p7 }
  0x25   : > { %p1049_p11 = por %p1048_p10, %p1047_p9 }
  0x26   : > { %p1043_p8 = pneg %p1042_p5 }
  0x27   : > { %922 = dma.hbm_to_vmem [thread:$0]  (!%p1303_p6), %s1531_s1, 256, %s265_s14, [#allocation6], %s1211_s23, %s1211_s23, %s1212_s24  }
  0x28   : > { %p1050_p12 = pnand %p1049_p11, %p1043_p8 }
  0x2a   : > { %1053 = shalt.err (!%p1050_p12)
}
  0x2b   : > { %s1532_s5 = sld [smem:[#allocation18_spill]]  ;;  %s1065_s13 = scalar_lea.vmem %s1309_s21, 256 }
  0x2c   : > { %p1066_p13 = scmp.ne.s32.totalorder %s1309_s21, %s1065_s13  ;;  %p1073_p5 = scmp.lt.s32.totalorder %s1309_s21, %s1309_s21 }
  0x2d   : > { %p1074_p8 = scmp.lt.s32.totalorder %s1065_s13, %s1065_s13 }
  0x2e   : > { %p1068_p0 = pnand %p1066_p13, %p1004_p7 }
  0x2f   : > { %p1075_p9 = por %p1074_p8, %p1073_p5 }
  0x30   : > { %p1069_p2 = pneg %p1068_p0 }
  0x31   : > { %928 = dma.hbm_to_vmem [thread:$0]  (!%p1303_p6), %s1532_s5, 256, %s1307_s18, [#allocation9], %s1211_s23, %s1211_s23, %s1212_s24  }
  0x32   : > { %p1076_p10 = pnand %p1075_p9, %p1069_p2 }
  0x34   : > { %1079 = shalt.err (!%p1076_p10)
}
  0x35   : > { %s1533_s3 = sld [smem:[#allocation17_spill]]  ;;  %s1213_s18 = smov [#allocation10]  }
  0x36   : > { %s312_s20 = sshll.u32 %s1213_s18, 4  ;;  %s313_s20 = int_to_ptr.vmem [resolvable:$true] %s312_s20 }
  0x37   : > { %s1091_s22 = scalar_lea.vmem %s313_s20, 256  ;;  %p1099_p0 = scmp.lt.s32.totalorder %s313_s20, %s313_s20 }
  0x38   : > { %p1092_p11 = scmp.ne.s32.totalorder %s313_s20, %s1091_s22  ;;  %p1100_p2 = scmp.lt.s32.totalorder %s1091_s22, %s1091_s22 }
  0x3a   : > { %p1094_p12 = pnand %p1092_p11, %p1004_p7  ;;  %p1101_p5 = por %p1100_p2, %p1099_p0 }
  0x3b   : > { %925 = dma.hbm_to_vmem [thread:$0]  (!%p1303_p6), %s1533_s3, 256, %s1309_s21, [#allocation6], %s1211_s23, %s1211_s23, %s1212_s24  }
  0x3c   : > { %p1095_p13 = pneg %p1094_p12 }
  0x3e   : > { %p1102_p8 = pnand %p1101_p5, %p1095_p13 }
  0x40   : > { %1105 = shalt.err (!%p1102_p8)
}
  0x41   : > { %s1534_s7 = sld [smem:[#allocation19_spill]]  ;;  %s819_s19 = sadd.s32 4294967294, %s1206_s12  }
  0x42   : > { %s1369_s26 = sadd.s32 1, %s1206_s12   ;;  %s34_s28 = sadd.s32 1, %s1202_s11 }
  0x43   : > { %s31_s27 = ssub.s32 %s1206_s12, %s1369_s26  ;;  %p41_p9 = scmp.ne.s32.totalorder %s1202_s11, %s1198_s10 }
  0x44   : > { %p32_p7 = scmp.eq.s32.totalorder %s31_s27, 0  ;;  %p42_p10 = scmp.eq.s32.totalorder %s1206_s12, 0 }
  0x45   : > { %p47_p11 = scmp.ne.s32.totalorder %s1198_s10, %s1194_s30  ;;  %p239_p13 = scmp.eq.s32.totalorder %s1289_s15, 1 }
  0x46   : > { %s1380_s29 = scalar_select %p32_p7, %s1202_s11, %s34_s28  }
  0x47   : > { %931 = dma.hbm_to_vmem [thread:$0]  (!%p1303_p6), %s1534_s7, 256, %s313_s20, [#allocation9], %s1211_s23, %s1211_s23, %s1212_s24  }
  0x48   : > { %p1382_p12 = por %p42_p10, %p41_p9  ;;  %p1388_p6 = por %p1521_p1, %p47_p11 }
  0x49   : > { %p245_p0 = scmp.eq.s32.totalorder %s819_s19, 1  ;;  %p944_p2 = scmp.lt.s32.totalorder %s1206_s12, 2 }
  0x4a   : > { %s1536_s23 = scalar_select %p1388_p6, 1, 0 }
  0x4b   : > { %s329_s24 = sand.u32 1, %s1202_s11   ;;  %p1395_p5 = por %p239_p13, %p41_p9 }
  0x4c   : > { %p1399_p8 = por %p245_p0, %p47_p11  ;;  %s826_s18 = sshll.u32 %s329_s24, 2 }
  0x4d   : > { %s1537_s14 = scalar_select %p1395_p5, 1, 0 }
  0x4e   : > { %s1538_s17 = scalar_select %p1399_p8, 1, 0 }
  0x4f   : > { %s827_s20 = sshll.u32 %s1206_s12, 6  ;;  %s333_s19 = scalar_lea.vmem [#allocation2], %s826_s18 }
  0x50   : > { %s1407_s25 = scalar_lea.hbm %s1511_s0, %s827_s20  ;;  %s340_s27 = sshll.u32 %s333_s19, 4  ;;  %s341_s27 = int_to_ptr.vmem [resolvable:$true] %s340_s27 }
  0x51   : > { %p1411_p7 = pnand %p944_p2, %p1382_p12  ;;  %s330_s1 = scalar_lea.sflag [#allocation3], %s329_s24 }
  0x52   : > { %s1106_s3 = scalar_lea.hbm %s1407_s25, 64  ;;  %s1111_s21 = scalar_lea.hbm %s1511_s0, 128 }
  0x53   : > { %p1107_p9 = scmp.ne.s32.totalorder %s1407_s25, %s1106_s3  ;;  %p1108_p10 = pneg %p1411_p7 }
  0x54   : > { %p1112_p0 = scmp.lt.s32.totalorder %s1407_s25, %s1511_s0  ;;  %p1113_p12 = scmp.lt.s32.totalorder %s1111_s21, %s1106_s3 }
  0x55   : > { %p1109_p11 = pnand %p1108_p10, %p1107_p9 }
  0x56   : > { %p1114_p2 = por %p1113_p12, %p1112_p0 }
  0x57   : > { %p1110_p13 = pneg %p1109_p11 }
  0x59   : > { %p1115_p4 = pnand %p1114_p2, %p1110_p13 }
  0x5b   : > { %1118 = shalt.err (!%p1115_p4)
}
  0x5c   : > { %s1119_s13 = scalar_lea.vmem %s341_s27, 64  ;;  %s1214_s24 = smov [#allocation2]  }
  0x5d   : > { %p1120_p1 = scmp.ne.s32.totalorder %s341_s27, %s1119_s13  ;;  %s1124_s5 = sshll.u32 %s1214_s24, 4  ;;  %s1125_s5 = int_to_ptr.vmem [resolvable:$false] %s1124_s5 }
  0x5e   : > { %s1126_s7 = scalar_lea.vmem %s1125_s5, 128  ;;  %p1127_p9 = scmp.lt.s32.totalorder %s341_s27, %s1125_s5 }
  0x5f   : > { %p1122_p8 = pnand %p1120_p1, %p1108_p10  ;;  %p1128_p11 = scmp.lt.s32.totalorder %s1126_s7, %s1119_s13 }
  0x61   : > { %p1123_p5 = pneg %p1122_p8  ;;  %p1129_p6 = por %p1128_p11, %p1127_p9 }
  0x63   : > { %p1130_p3 = pnand %p1129_p6, %p1123_p5 }
  0x65   : > { %1133 = shalt.err (!%p1130_p3)
}
  0x66   : > { %935 = dma.hbm_to_vmem [thread:$0]  (!%p1411_p7), %s1407_s25, 64, %s341_s27, %s330_s1  }
  0x67   : > { %p1540_p13 = scmp.ne.s32.totalorder %s1529_s16, 0 }
  0x68   : > { %s1432_s3 = sand.u32 (!%p1540_p13), 1, %s1198_s10   ;;  %p1541_p1 = scmp.ne.s32.totalorder (!%p1540_p13), %s1536_s23, 0 }
  0x69   : > { %349 = sbr.rel (%p1540_p13) target bundleno = 969 (0x3c9), region = 56  ;;  %s829_s20 = sshll.u32 (!%p1540_p13), %s1432_s3, 2 }
  0x6a   : > { %s352_s22 = scalar_lea.sflag (!%p1540_p13), [#allocation3], %s1432_s3  ;;  %s355_s5 = scalar_lea.vmem (!%p1540_p13), [#allocation2], %s829_s20 }
  0x6e   : > { %1177 = dma.done.wait (%p1541_p1), %s352_s22, 64  }
  0x6f   : > { %1179 = vsyncadd (%p1541_p1), %s352_s22, 4294967232  ;;  %p1542_p3 = scmp.eq.s32.totalorder %s1289_s15, 0 }
  0x71   : > { %1181 = dma.done.wait (%p1542_p3), [#allocation6], 512   ;;  %p1543_p4 = pmov %p1542_p3 }
  0x72   : > { %p1544_p6 = pmov %p1542_p3 }
  0x73   : > { %1183 = vsyncadd (%p1543_p4), [#allocation6], 4294966784 }
  0x74   : > { %1185 = dma.done.wait (%p1544_p6), [#allocation9], 512   ;;  %p1545_p5 = pmov %p1542_p3 }
  0x75   : > { %v1215_v0 = vmov 0.0   ;;  %vm1216_vm0 = vmmov 0   ;;  %v990_v1 = vld [vmem:[#allocation5 + $0x8] sm:$0xff]   ;;  %v991_v2 = vld [vmem:[#allocation5] sm:$0xff]   ;;  %vm431_vm1 = vcmask 261120   ;;  %v992_v3 = vld [vmem:[#allocation7 + $0x8] sm:$0xff]   ;;  %v678_v44 = vlaneseq }
  0x76   : > { %1187 = vsyncadd (%p1545_p5), [#allocation9], 4294966784  ;;  %867 = vmatprep.subr.bf16.mxu0 %v1215_v0  ;;  %871 = vmatprep.mubr.msk.bf16.mxu0 %vm1216_vm0, %v1215_v0  ;;  %v407_v4 = vld [vmem:[%s355_s5] sm:$0xf]  ;;  %v993_v5 = vld [vmem:[#allocation7] sm:$0xff]   ;;  %s834_s18 = sshll.u32 %s1432_s3, 3 }
  0x77   : > { %875 = vmatprep.subr.bf16.mxu1 %v1215_v0  ;;  %879 = vmatprep.mubr.msk.bf16.mxu1 %vm1216_vm0, %v1215_v0  ;;  %v994_v6 = vld [vmem:[#allocation8 + $0x8] sm:$0xff]   ;;  %v835_v7 = vld [vmem:[%s1513_s2] ss:$0 sm:$0xff]  ;;  %v995_v14 = vld [vmem:[#allocation8] sm:$0xff]   ;;  %v679_v46 = vand.u32 127, %v678_v44  ;;  %s852_s19 = sshll.u32 %s1289_s15, 7 }
  0x78   : > { %868 = vmatpush3.bf16.msra.mxu0 %v990_v1  ;;  %876 = vmatpush3.bf16.msra.mxu1 %v992_v3  ;;  %v996_v15 = vld [vmem:[#allocation10 + $0x8] sm:$0xff]   ;;  %v997_v24 = vld [vmem:[#allocation10] sm:$0xff]   ;;  %s405_s13 = scalar_lea.vmem [#allocation11], %s834_s18  ;;  %s1473_s5 = scalar_lea.hbm %s1520_s9, %s852_s19 }
  0x79   : > { %869 = vmatprep.subr.bf16.mxu0 %v1215_v0  ;;  %877 = vmatprep.subr.bf16.mxu1 %v1215_v0  ;;  %v839_v16 = vld [vmem:[%s1515_s4] ss:$0 sm:$0xff]  ;;  %s711_s24 = sshll.u32 %s405_s13, 4  ;;  %vm694_vm3 = vcmp.ge.s32.totalorder %v679_v46, 16  ;;  %s698_s1 = scalar_lea.sflag [#allocation4], %s1432_s3  ;;  %s712_s24 = int_to_ptr.vmem [resolvable:$true] %s711_s24 }
  0x7a   : > { %v843_v25 = vld [vmem:[%s1517_s6] ss:$0 sm:$0xff]  ;;  %s1134_s7 = scalar_lea.vmem %s712_s24, 128  ;;  %p1546_p7 = scmp.ne.s32.totalorder %s1537_s14, 0 }
  0x7b   : > { %v847_v33 = vld [vmem:[%s1519_s8] ss:$0 sm:$0xff]  ;;  %p1135_p8 = scmp.ne.s32.totalorder %s712_s24, %s1134_s7  ;;  %s1217_s15 = smov [#allocation11]  }
  0x7c   : > { %870 = vmatpush3.bf16.msra.mxu0 %v991_v2  ;;  %878 = vmatpush3.bf16.msra.mxu1 %v993_v5  ;;  %s1138_s16 = sshll.u32 %s1217_s15, 4  ;;  %s1139_s16 = int_to_ptr.vmem [resolvable:$false] %s1138_s16 }
  0x7d   : > { %883 = vmatprep.subr.bf16.mxu0 %v1215_v0  ;;  %891 = vmatprep.subr.bf16.mxu1 %v1215_v0  ;;  %p1136_p10 = pnand %p1135_p8, %p1546_p7  ;;  %s1140_s23 = scalar_lea.vmem %s1139_s16, 256 }
  0x7e   : > { %p1141_p12 = scmp.lt.s32.totalorder %s712_s24, %s1139_s16  ;;  %p1142_p2 = scmp.lt.s32.totalorder %s1140_s23, %s1134_s7 }
  0x7f   : > { %872 = vmatmul.mubr.msk.bf16.vlgmr.msra.gmra.mxu0 %vm431_vm1, %v407_v4  ;;  %p1137_p0 = pneg %p1136_p10 }
  0x80   : > { %887 = vmatprep.mubr.msk.bf16.mxu0 %vm1216_vm0, %v1215_v0  ;;  %884 = vmatpush3.bf16.msra.mxu0 %v994_v6  ;;  %p1143_p9 = por %p1142_p2, %p1141_p12 }
  0x81   : > { %885 = vmatprep.subr.bf16.mxu0 %v1215_v0 }
  0x82   : > { %p1144_p11 = pnand %p1143_p9, %p1137_p0 }
  0x84   : > { %886 = vmatpush3.bf16.msra.mxu0 %v995_v14 }
 0x13f   : > { %v469_v8 = vpop.f32.mrf.mxu0 }
 0x140   : > { %v470_v9 = vadd.f32 %v835_v7, %v469_v8 }
 0x141   : > { %v873_v10 = vpop.f32.mrf.mxu0 }
 0x142   : > { %v475_v11 = vpack.c.bf16 %v470_v9, %v470_v9 }
 0x143   : > { %v472_v12 = vpop.f32.mrf.mxu0 }
 0x144   : > { %880 = vmatmul.mubr.msk.bf16.vlgmr.msra.gmra.mxu1 %vm431_vm1, %v475_v11 }
 0x145   : > { %v874_v13 = vpop.f32.mrf.mxu0  ;;  %895 = vmatprep.mubr.msk.bf16.mxu1 %vm1216_vm0, %v1215_v0  ;;  %892 = vmatpush3.bf16.msra.mxu1 %v996_v15 }
 0x146   : > { %893 = vmatprep.subr.bf16.mxu1 %v1215_v0 }
 0x149   : > { %894 = vmatpush3.bf16.msra.mxu1 %v997_v24 }
 0x204   : > { %v536_v17 = vpop.f32.mrf.mxu1 }
 0x205   : > { %v537_v18 = vadd.f32 %v839_v16, %v536_v17 }
 0x206   : > { %v881_v19 = vpop.f32.mrf.mxu1 }
 0x207   : > { %v542_v20 = vmax.f32 %v537_v18, 0.0 }
 0x208   : > { %v539_v21 = vpop.f32.mrf.mxu1 }
 0x209   : > { %v543_v22 = vpack.c.bf16 %v542_v20, %v542_v20 }
 0x20a   : > { %v882_v23 = vpop.f32.mrf.mxu1 }
 0x20b   : > { %888 = vmatmul.mubr.msk.bf16.vlgmr.msra.gmra.mxu0 %vm431_vm1, %v543_v22 }
 0x2cb   : > { %v604_v26 = vpop.f32.mrf.mxu0 }
 0x2cc   : > { %v605_v27 = vadd.f32 %v843_v25, %v604_v26 }
 0x2cd   : > { %v889_v28 = vpop.f32.mrf.mxu0 }
 0x2ce   : > { %v610_v29 = vmax.f32 %v605_v27, 0.0 }
 0x2cf   : > { %v607_v30 = vpop.f32.mrf.mxu0 }
 0x2d0   : > { %v611_v31 = vpack.c.bf16 %v610_v29, %v610_v29 }
 0x2d1   : > { %v890_v32 = vpop.f32.mrf.mxu0 }
 0x2d2   : > { %896 = vmatmul.mubr.msk.bf16.vlgmr.msra.gmra.mxu1 %vm431_vm1, %v611_v31 }
 0x392   : > { %v672_v34 = vpop.f32.mrf.mxu1 }
 0x393   : > { %v673_v35 = vadd.f32 %v847_v33, %v672_v34 }
 0x394   : > { %v897_v36 = vpop.f32.mrf.mxu1 }
 0x395   : > { %v681_v37 = vmin.f32 %v673_v35, 20.0  ;;  %vm680_vm4 = vcmp.gt.f32.partialorder %v673_v35, 20.0 }
 0x396   : > { %v675_v38 = vpop.f32.mrf.mxu1 }
 0x397   : > { %v682_v39 = vmul.f32 1.442695, %v681_v37 }
 0x398   : > { %v898_v40 = vpop.f32.mrf.mxu1 }
 0x399   : > { %998 = vpow2.f32 %v682_v39 }
 0x3a6   : > { %v999_v41 = vpop.eup %998 }
 0x3a7   : > { %v684_v42 = vadd.f32 1.0, %v999_v41  ;;  %v687_v43 = vmul.f32 -0.5, %v999_v41  ;;  %v690_v47 = vand.u32 2147483647, %v999_v41 }
 0x3a9   : > { %1000 = vlog2.f32 %v684_v42  ;;  %v688_v45 = vadd.f32 1.0, %v687_v43  ;;  %vm691_vm2 = vcmp.lt.f32.partialorder %v690_v47, 0.0004427343 }
 0x3ab   : > { %v689_v50 = vmul.f32 %v999_v41, %v688_v45 }
 0x3b6   : > { %v1001_v48 = vpop.eup %1000 }
 0x3b7   : > { %v686_v49 = vmul.f32 0.6931472, %v1001_v48 }
 0x3b9   : > { %v692_v51 = vsel %vm691_vm2, %v689_v50, %v686_v49 }
 0x3ba   : > { %v693_v52 = vsel %vm680_vm4, %v673_v35, %v692_v51 }
 0x3bb   : > { %v695_v53 = vsel %vm694_vm3, %v693_v52, %v673_v35 }
 0x3bc   : > { %696 = vst.msk [vmem:[%s405_s13] sm:$0xff] %vm431_vm1, %v695_v53 }
 0x3bd   : > { %1147 = shalt.err (!%p1144_p11)
}
 0x3be   : > { %s1148_s25 = scalar_lea.hbm %s1473_s5, 128  ;;  %s1152_s28 = scalar_lea.hbm %s1520_s9, 256 }
 0x3bf   : > { %p1149_p13 = scmp.ne.s32.totalorder %s1473_s5, %s1148_s25  ;;  %p1153_p4 = scmp.lt.s32.totalorder %s1473_s5, %s1520_s9 }
 0x3c0   : > { %p1154_p6 = scmp.lt.s32.totalorder %s1152_s28, %s1148_s25 }
 0x3c1   : > { %p1150_p1 = pnand %p1149_p13, %p1546_p7 }
 0x3c2   : > { %p1155_p5 = por %p1154_p6, %p1153_p4 }
 0x3c3   : > { %p1151_p3 = pneg %p1150_p1 }
 0x3c5   : > { %p1156_p8 = pnand %p1155_p5, %p1151_p3 }
 0x3c7   : > { %1159 = shalt.err (!%p1156_p8)
}
 0x3c8   : > { %917 = dma.vmem_to_hbm [thread:$0]  (%p1546_p7), %s712_s24, 128, %s1473_s5, %s698_s1  }
 0x3c9 PF: > { %s723_s19 = sand.u32 1, %s1194_s30   ;;  %p1547_p10 = scmp.ne.s32.totalorder %s1538_s17, 0 }
 0x3ca   : > { %p1548_p0 = scmp.ge.s32.totalorder %s1206_s12, 2  ;;  %s724_s13 = scalar_lea.sflag [#allocation4], %s723_s19 }
 0x3cc   : > { %p937_p12 = pnand %p1548_p0, %p1547_p10 }
 0x3ce   : > { %p938_p2 = pneg %p937_p12 }
 0x3d0   : > { %1189 = dma.done.wait (%p938_p2), %s724_s13, 128  }
 0x3d1   : > { %1191 = vsyncadd (%p938_p2), %s724_s13, 4294967168  ;;  %p24_p9 = scmp.ge.s32.totalorder %s1369_s26, 4   ;;  %s1549_s30 = smov %s1198_s10 }
 0x3d2   : > { %s1550_s10 = smov %s1202_s11  ;;  %s1551_s11 = smov %s1380_s29 }
 0x3d3   : > { %s1552_s12 = smov %s1369_s26  ;;  %26 = sbr.rel (!%p24_p9) target bundleno = 12 (0xc), region = 117 }
 0x3d8   :  { %729 = vsyncpa [#allocation3], 1 }
 0x3d9   :  { %731 = vsyncpa [#allocation3 + $0x1], 1 }
 0x3da   :  { %732 = vsyncpa [#allocation6], 1 }
 0x3db   :  { %733 = vsyncpa [#allocation9], 1 }
 0x3dc   :  { %734 = vsyncpa [#allocation4], 1 }
 0x3dd   :  { %736 = vsyncpa [#allocation4 + $0x1], 1 }

</bundles_post_ra>
